<compile_context>
chip_gen: v7x
topology: tpu7x:2x2x1
jax: 0.10.0
libtpu: 0.0.40
codegen_flags: <defaults>
</compile_context>

<pallas_src>
import functools
import math

import jax
import jax.numpy as jnp
from jax.experimental import pallas as pl
from jax.experimental.pallas import tpu as pltpu


def _sce_kernel(logits_ref, targets_ref, out_ref, acc_ref, *,
                alpha, beta, A, n_total):
    i = pl.program_id(0)

    @pl.when(i == 0)
    def _():
        acc_ref[...] = jnp.zeros_like(acc_ref)

    logits = logits_ref[...].astype(jnp.float32)            # (tn, C)
    tgt = targets_ref[...]                                   # (tn, 1) int32
    tn, c = logits.shape

    # --- shared, numerically-stable softmax pieces ------------------------
    m = jnp.max(logits, axis=1, keepdims=True)               # (tn, 1)
    z = logits - m
    e = jnp.exp(z)
    s = jnp.sum(e, axis=1, keepdims=True)                    # (tn, 1)
    inv_s = pl.reciprocal(s, approx=False)                   # EUP, per-row
    probs = e * inv_s                                         # (tn, C)

    eps = jnp.finfo(jnp.float32).eps
    probs_c = jnp.clip(probs, eps, 1.0 - eps)

    # one-hot via lane-iota compare (no gather, no MXU)
    col = jax.lax.broadcasted_iota(jnp.int32, (tn, c), 1)
    one_hot = (col == tgt).astype(jnp.float32)                # (tn, C)

    # CE:  -log_softmax[target] = log(s) - z[target]   (sum(one_hot) == 1)
    ce_row = jnp.log(s) - jnp.sum(one_hot * z, axis=1, keepdims=True)   # (tn,1)

    # Reverse CE, closed form of log(clip(one_hot, 10**A, 1)):
    #   log(one_hot_c) = (A*ln10) * (1 - one_hot)   for A < 0
    rce_coeff = -(A * math.log(10.0))
    rce_row = rce_coeff * jnp.sum(probs_c * (1.0 - one_hot),
                                  axis=1, keepdims=True)                 # (tn,1)

    combined = alpha * ce_row + beta * rce_row                           # (tn,1)

    # mask rows of a partial last tile out of the mean
    row = i * tn + jax.lax.broadcasted_iota(jnp.int32, (tn, 1), 0)
    combined = jnp.where(row < n_total, combined, 0.0)

    acc_ref[...] += jnp.sum(combined, axis=0, keepdims=True)             # (1,1)

    @pl.when(i == pl.num_programs(0) - 1)
    def _():
        out_ref[...] = acc_ref[...] * (1.0 / n_total)


def symmetric_cross_entropy_loss(logits, targets, *, num_classes,
                                 alpha=0.1, beta=1.0, A=-4, tile_n=256):
    """logits: [N, C] (any float dtype), targets: [N] int. Returns f32 scalar."""
    n, c = logits.shape
    assert c == num_classes
    targets2d = targets.astype(jnp.int32).reshape(n, 1)

    # Row tile: biggest legal tile (multiple of 8, or the full batch dim).
    # TODO(synk): on v7x (64 MiB VMEM) with very large C, lower tile_n (~64-128).
    tn = n if n <= tile_n else tile_n
    grid = (pl.cdiv(n, tn),)

    kernel = functools.partial(
        _sce_kernel, alpha=float(alpha), beta=float(beta), A=float(A),
        n_total=int(n))

    out = pl.pallas_call(
        kernel,
        out_shape=jax.ShapeDtypeStruct((1, 1), jnp.float32),
        grid=grid,
        in_specs=[
            pl.BlockSpec((tn, c), lambda i: (i, 0)),   # class axis kept whole (lanes)
            pl.BlockSpec((tn, 1), lambda i: (i, 0)),
        ],
        out_specs=pl.BlockSpec((1, 1), lambda i: (0, 0)),
        scratch_shapes=[pltpu.VMEM((1, 1), jnp.float32)],
        compiler_params=pltpu.CompilerParams(
            dimension_semantics=("arbitrary",)),
    )(logits, targets2d)                               # no wrapper-side upcast
    return out[0, 0]


def _reference(logits, targets, *, num_classes, alpha=0.1, beta=1.0, A=-4):
    # Pure-JAX reference mirroring the PyTorch module.
    eps = jnp.finfo(jnp.float32).eps
    logits = logits.astype(jnp.float32)
    log_probs = jax.nn.log_softmax(logits, axis=1)
    ce = -jnp.mean(jnp.take_along_axis(log_probs, targets[:, None], axis=1))
    probs = jnp.clip(jax.nn.softmax(logits, axis=1), eps, 1.0 - eps)
    one_hot = jnp.clip(jax.nn.one_hot(targets, num_classes,
                                      dtype=jnp.float32), 10.0 ** A, 1.0)
    rce = jnp.mean(-jnp.sum(probs * jnp.log(one_hot), axis=1))
    return alpha * ce + beta * rce


if __name__ == "__main__":
    num_classes = 10
    batch = 8

    key = jax.random.PRNGKey(0)
    k_logits, k_targets = jax.random.split(key)
    logits = jax.random.normal(k_logits, (batch, num_classes), dtype=jnp.float32)
    targets = jax.random.randint(k_targets, (batch,), 0, num_classes,
                                 dtype=jnp.int32)

    loss = symmetric_cross_entropy_loss(
        logits, targets, num_classes=num_classes, alpha=0.1, beta=1.0, A=-4)
    loss = jax.block_until_ready(loss)

    ref = _reference(logits, targets, num_classes=num_classes,
                     alpha=0.1, beta=1.0, A=-4)
    assert jnp.allclose(loss, ref, rtol=1e-5, atol=1e-5), (loss, ref)

    print("KERNEL_OK")
</pallas_src>

<mosaic_0001>
module attributes {stable_mosaic.version = 11 : i64} {
  func.func @_sce_kernel(%arg0: i32, %arg1: memref<8x10xf32, #tpu.memory_space<vmem>>, %arg2: memref<8x1xi32, #tpu.memory_space<vmem>>, %arg3: memref<1x1xf32, #tpu.memory_space<vmem>>, %arg4: memref<1x1xf32, #tpu.memory_space<vmem>>) attributes {dimension_semantics = [#tpu.dimension_semantics<arbitrary>], iteration_bounds = array<i64: 1>, scalar_prefetch = 0 : i64, scratch_operands = 1 : i64, tpu.core_type = #tpu.core_type<tc>, window_params = [{transform_indices = @transform_0, window_bounds = array<i64: 8, 10>}, {transform_indices = @transform_1, window_bounds = array<i64: 8, 1>}, {pipeline_mode = #tpu.pipeline_mode<synchronous>, transform_indices = @transform_2, window_bounds = array<i64: 1, 1>}]} {
    %c0_i32 = arith.constant 0 : i32
    %0 = arith.cmpi eq, %arg0, %c0_i32 : i32
    %1 = arith.extui %0 : i1 to i32
    %c0_i32_0 = arith.constant 0 : i32
    %2 = arith.cmpi ne, %1, %c0_i32_0 : i32
    scf.if %2 {
      %cst_22 = arith.constant 0.000000e+00 : f32
      %57 = vector.broadcast %cst_22 : f32 to vector<1x1xf32>
      %c0_23 = arith.constant 0 : index
      %c0_24 = arith.constant 0 : index
      %58 = vector.load %arg4[%c0_23, %c0_24] : memref<1x1xf32, #tpu.memory_space<vmem>>, vector<1x1xf32>
      tpu.vector_store %arg4[%c0_23, %c0_24], %57 {strides = array<i32>} : memref<1x1xf32, #tpu.memory_space<vmem>>, vector<1x1xf32>,
    } else {
    }
    %c0 = arith.constant 0 : index
    %c0_1 = arith.constant 0 : index
    %3 = vector.load %arg1[%c0, %c0_1] : memref<8x10xf32, #tpu.memory_space<vmem>>, vector<8x10xf32>
    %c0_2 = arith.constant 0 : index
    %c0_3 = arith.constant 0 : index
    %4 = vector.load %arg2[%c0_2, %c0_3] : memref<8x1xi32, #tpu.memory_space<vmem>>, vector<8x1xi32>
    %cst = arith.constant dense<0xFF800000> : vector<8xf32>
    %5 = vector.multi_reduction <maximumf>, %3, %cst [1] : vector<8x10xf32> to vector<8xf32>
    %6 = vector.shape_cast %5 : vector<8xf32> to vector<8x1xf32>
    %7 = vector.broadcast %6 : vector<8x1xf32> to vector<8x10xf32>
    %8 = arith.subf %3, %7 : vector<8x10xf32>
    %9 = math.exp %8 : vector<8x10xf32>
    %cst_4 = arith.constant dense<0.000000e+00> : vector<8xf32>
    %10 = vector.multi_reduction <add>, %9, %cst_4 [1] : vector<8x10xf32> to vector<8xf32>
    %11 = vector.shape_cast %10 : vector<8xf32> to vector<8x1xf32>
    %12 = tpu.reciprocal %11 : vector<8x1xf32> -> vector<8x1xf32>
    %13 = vector.broadcast %12 : vector<8x1xf32> to vector<8x10xf32>
    %14 = arith.mulf %9, %13 : vector<8x10xf32>
    %cst_5 = arith.constant 1.1920929E-7 : f32
    %cst_6 = arith.constant 0.99999988 : f32
    %15 = vector.broadcast %cst_5 : f32 to vector<8x10xf32>
    %16 = arith.maximumf %15, %14 : vector<8x10xf32>
    %17 = vector.broadcast %cst_6 : f32 to vector<8x10xf32>
    %18 = arith.minimumf %17, %16 : vector<8x10xf32>
    %19 = tpu.iota {dimensions = array<i32: 1>} : vector<8x10xi32>
    %20 = vector.broadcast %4 : vector<8x1xi32> to vector<8x10xi32>
    %21 = arith.cmpi eq, %19, %20 : vector<8x10xi32>
    %22 = arith.extui %21 : vector<8x10xi1> to vector<8x10xi32>
    %23 = arith.sitofp %22 : vector<8x10xi32> to vector<8x10xf32>
    %24 = math.log %11 : vector<8x1xf32>
    %25 = arith.mulf %23, %8 : vector<8x10xf32>
    %cst_7 = arith.constant dense<0.000000e+00> : vector<8xf32>
    %26 = vector.multi_reduction <add>, %25, %cst_7 [1] : vector<8x10xf32> to vector<8xf32>
    %27 = vector.shape_cast %26 : vector<8xf32> to vector<8x1xf32>
    %28 = arith.subf %24, %27 : vector<8x1xf32>
    %cst_8 = arith.constant 1.000000e+00 : f32
    %29 = vector.broadcast %cst_8 : f32 to vector<8x10xf32>
    %30 = arith.subf %29, %23 : vector<8x10xf32>
    %31 = arith.mulf %18, %30 : vector<8x10xf32>
    %cst_9 = arith.constant dense<0.000000e+00> : vector<8xf32>
    %32 = vector.multi_reduction <add>, %31, %cst_9 [1] : vector<8x10xf32> to vector<8xf32>
    %33 = vector.shape_cast %32 : vector<8xf32> to vector<8x1xf32>
    %cst_10 = arith.constant 9.21034049 : f32
    %34 = vector.broadcast %cst_10 : f32 to vector<8x1xf32>
    %35 = arith.mulf %34, %33 : vector<8x1xf32>
    %cst_11 = arith.constant 1.000000e-01 : f32
    %36 = vector.broadcast %cst_11 : f32 to vector<8x1xf32>
    %37 = arith.mulf %36, %28 : vector<8x1xf32>
    %cst_12 = arith.constant 1.000000e+00 : f32
    %38 = vector.broadcast %cst_12 : f32 to vector<8x1xf32>
    %39 = arith.mulf %38, %35 : vector<8x1xf32>
    %40 = arith.addf %37, %39 : vector<8x1xf32>
    %c8_i32 = arith.constant 8 : i32
    %41 = arith.muli %arg0, %c8_i32 : i32
    %42 = tpu.iota {dimensions = array<i32: 0>} : vector<8x1xi32>
    %43 = vector.broadcast %41 : i32 to vector<8x1xi32>
    %44 = arith.addi %43, %42 : vector<8x1xi32>
    %c8_i32_13 = arith.constant 8 : i32
    %45 = vector.broadcast %c8_i32_13 : i32 to vector<8x1xi32>
    %46 = arith.cmpi slt, %44, %45 : vector<8x1xi32>
    %cst_14 = arith.constant 0.000000e+00 : f32
    %47 = vector.broadcast %cst_14 : f32 to vector<8x1xf32>
    %48 = arith.select %46, %40, %47 : vector<8x1xi1>, vector<8x1xf32>
    %c0_15 = arith.constant 0 : index
    %c0_16 = arith.constant 0 : index
    %49 = vector.load %arg4[%c0_15, %c0_16] : memref<1x1xf32, #tpu.memory_space<vmem>>, vector<1x1xf32>
    %cst_17 = arith.constant dense<0.000000e+00> : vector<1xf32>
    %50 = vector.multi_reduction <add>, %48, %cst_17 [0] : vector<8x1xf32> to vector<1xf32>
    %51 = vector.shape_cast %50 : vector<1xf32> to vector<1x1xf32>
    %52 = arith.addf %49, %51 : vector<1x1xf32>
    %c0_18 = arith.constant 0 : index
    %c0_19 = arith.constant 0 : index
    %53 = vector.load %arg4[%c0_18, %c0_19] : memref<1x1xf32, #tpu.memory_space<vmem>>, vector<1x1xf32>
    tpu.vector_store %arg4[%c0_18, %c0_19], %52 {strides = array<i32>} : memref<1x1xf32, #tpu.memory_space<vmem>>, vector<1x1xf32>,
    %c0_i32_20 = arith.constant 0 : i32
    %54 = arith.cmpi eq, %arg0, %c0_i32_20 : i32
    %55 = arith.extui %54 : i1 to i32
    %c0_i32_21 = arith.constant 0 : i32
    %56 = arith.cmpi ne, %55, %c0_i32_21 : i32
    scf.if %56 {
      %c0_22 = arith.constant 0 : index
      %c0_23 = arith.constant 0 : index
      %57 = vector.load %arg4[%c0_22, %c0_23] : memref<1x1xf32, #tpu.memory_space<vmem>>, vector<1x1xf32>
      %cst_24 = arith.constant 1.250000e-01 : f32
      %58 = vector.broadcast %cst_24 : f32 to vector<1x1xf32>
      %59 = arith.mulf %57, %58 : vector<1x1xf32>
      %c0_25 = arith.constant 0 : index
      %c0_26 = arith.constant 0 : index
      %60 = vector.load %arg3[%c0_25, %c0_26] : memref<1x1xf32, #tpu.memory_space<vmem>>, vector<1x1xf32>
      tpu.vector_store %arg3[%c0_25, %c0_26], %59 {strides = array<i32>} : memref<1x1xf32, #tpu.memory_space<vmem>>, vector<1x1xf32>,
    } else {
    }
    return
  }
  func.func @transform_0(%arg0: i32) -> (i32, i32) {
    %c0_i32 = arith.constant 0 : i32
    %c0_i32_0 = arith.constant 0 : i32
    return %arg0, %c0_i32 : i32, i32
  }
  func.func @transform_1(%arg0: i32) -> (i32, i32) {
    %c0_i32 = arith.constant 0 : i32
    %c0_i32_0 = arith.constant 0 : i32
    return %arg0, %c0_i32 : i32, i32
  }
  func.func @transform_2(%arg0: i32) -> (i32, i32) {
    %c0_i32 = arith.constant 0 : i32
    %c0_i32_0 = arith.constant 0 : i32
    %c0_i32_1 = arith.constant 0 : i32
    return %c0_i32, %c0_i32_0 : i32, i32
  }
}

</mosaic_0001>

<bundles_post_ra>
// kernel: tpu_custom_call.1
= control target key start
LH: loop header
LB: loop body
LE: loop exit
PB: predicated region body
PF: predicated region fallthrough
CT: control target
= control target key end

     0   :  { %vm20_vm0 = vcmask 80896   ;;  %s173_s0 = inlined_call_operand.vmem [shape: f32[8,10], index: 0, kind: input, shape index: {}]   ;;  %s174_s1 = inlined_call_operand.vmem [shape: s32[8,1], index: 1, kind: input, shape index: {}]   ;;  %s175_s2 = inlined_call_operand.hbm [shape: f32[1,1], index: 2, kind: output, shape index: {}]  }
   0x1   :  { %v18_v0 = vld [vmem:[%s173_s0] sm:$0xff] }
   0x2   :  { %v19_v1 = vld [vmem:[%s174_s1] sm:$0xff] }
   0x3   :  { %7 = vsyncpa [#allocation4], 0  ;;  %v21_v2 = vsel %vm20_vm0, %v18_v0, -inf  ;;  %v130_v3 = vmov 0   ;;  %vm16_vm1 = vcmask 0   ;;  %v131_v4 = vmov 0.0  }
   0x4   :  { %98 = vset.pattern.permute.xlu1 %v130_v3  ;;  %99 = vset.pattern.permute.xlu0 %v130_v3  ;;  %17 = vst.msk [vmem:[#allocation2] sm:$0x1] %vm16_vm1, %v131_v4  ;;  %v34_v5 = vlaneseq  ;;  %s132_s0 = smov [#allocation3]  }
   0x5   :  { %22 = vmax.xlane.f32.xlu0 %v21_v2  ;;  %37 = vperm.xlu1 %98, %v19_v1   ;;  %s86_s1 = sshll.u32 %s132_s0, 4  ;;  %s87_s1 = int_to_ptr.vmem [resolvable:$true] %s86_s1 }
   0x6   :  { %v35_v6 = vand.u32 127, %v34_v5  ;;  %s106_s13 = scalar_lea.vmem %s87_s1, 16  ;;  %s110_s14 = scalar_lea.vmem %s87_s1, 32 }
   0x7   :  { %p107_p0 = scmp.ne.s32.totalorder %s87_s1, %s106_s13  ;;  %p111_p1 = scmp.lt.s32.totalorder %s87_s1, %s87_s1 }
   0x8   :  { %p112_p2 = scmp.lt.s32.totalorder %s110_s14, %s106_s13 }
   0xa   :  { %p113_p3 = por %p112_p2, %p111_p1 }
   0xb   :  { %v64_v37 = vld [vmem:[#allocation2] sm:$0x1] }
   0xc   :  { %p114_p4 = pnand %p113_p3, %p107_p0 }
  0x84   :  { %v38_v7 = vpop.permute.xlu1 %37 }
  0x85   :  { %vm39_vm2 = vcmp.eq.s32.totalorder %v35_v6, %v38_v7 }
  0x86   :  { %v94_v8 = vsel %vm39_vm2, 1.0, %v131_v4 }
  0x87   :  { %v49_v19 = vsub.f32 1.0, %v94_v8 }
  0x92   :  { %v23_v9 = vpop.xlane.xlu0 %22 }
  0x93   :  { %v24_v10 = vsub.f32 %v18_v0, %v23_v9 }
  0x95   :  { %v25_v11 = vmul.f32 1.442695, %v24_v10  ;;  %v44_v12 = vmul.f32 %v94_v8, %v24_v10 }
  0x97   :  { %100 = vpow2.f32 %v25_v11  ;;  %v45_v13 = vsel %vm20_vm0, %v44_v12, 0.0 }
  0x98   :  { %46 = vadd.xlane.f32.xlu1 %v45_v13 }
  0xa1   :  { %v101_v14 = vpop.eup %100 }
  0xa2   :  { %v27_v15 = vsel %vm20_vm0, %v101_v14, 0.0 }
  0xa3   :  { %28 = vadd.xlane.f32.xlu0 %v27_v15 }
 0x125   :  { %v47_v26 = vpop.xlane.xlu1 %46 }
 0x130   :  { %v29_v16 = vpop.xlane.xlu0 %28 }
 0x131   :  { %102 = vrcp.f32 %v29_v16 }
 0x132   :  { %104 = vlog2.f32 %v29_v16 }
 0x13b   :  { %v103_v17 = vpop.eup %102 }
 0x13c   :  { %v31_v18 = vmul.f32 %v103_v17, %v101_v14  ;;  %v105_v24 = vpop.eup %104 }
 0x13d   :  { %v43_v25 = vmul.f32 0.6931472, %v105_v24 }
 0x13e   :  { %v32_v20 = vmax.f32 %v31_v18, 1.1920929e-07 }
 0x13f   :  { %v48_v27 = vsub.f32 %v43_v25, %v47_v26 }
 0x140   :  { %v33_v21 = vmin.f32 %v32_v20, 0.9999999 }
 0x141   :  { %v55_v30 = vmul.f32 0.1, %v48_v27 }
 0x142   :  { %v50_v22 = vmul.f32 %v49_v19, %v33_v21 }
 0x144   :  { %v51_v23 = vsel %vm20_vm0, %v50_v22, 0.0 }
 0x145   :  { %52 = vadd.xlane.f32.xlu0 %v51_v23 }
 0x1d2   :  { %v53_v28 = vpop.xlane.xlu0 %52 }
 0x1d3   :  { %v54_v29 = vmul.f32 9.2103405, %v53_v28 }
 0x1d5   :  { %v56_v31 = vadd.f32 %v55_v30, %v54_v29 }
 0x1d7   :  { %v65_v32 = vrot.slane %v56_v31, 4 }
 0x1d9   :  { %v66_v33 = vadd.f32 %v65_v32, %v56_v31 }
 0x1db   :  { %v67_v34 = vrot.slane %v66_v33, 2 }
 0x1dd   :  { %v68_v35 = vadd.f32 %v67_v34, %v66_v33 }
 0x1df   :  { %v69_v36 = vrot.slane %v68_v35, 1 }
 0x1e1   :  { %v70_v38 = vadd.f32 %v69_v36, %v68_v35 }
 0x1e3   :  { %v71_v39 = vadd.f32 %v70_v38, %v64_v37 }
 0x1e5   :  { %73 = vst.msk [vmem:[#allocation2] sm:$0x1] %vm16_vm1, %v71_v39 }
 0x1ec   :  { %v77_v40 = vld [vmem:[#allocation2] sm:$0x1] }
 0x1ed   :  { %v78_v41 = vmul.f32 0.125, %v77_v40 }
 0x1ef   :  { %79 = vst.msk [vmem:[#allocation3] sm:$0x1] %vm16_vm1, %v78_v41 }
 0x1f0   :  { %117 = shalt.err (!%p114_p4)
}
 0x1f1   :  { %s118_s17 = scalar_lea.hbm %s175_s2, 16 }
 0x1f2   :  { %p119_p5 = scmp.ne.s32.totalorder %s175_s2, %s118_s17  ;;  %p122_p6 = scmp.lt.u32.totalorder %s118_s17, %s175_s2 }
 0x1f4   :  { %p124_p7 = pnand %p122_p6, %p119_p5 }
 0x1f6   :  { %127 = shalt.err (!%p124_p7)
}
 0x1f7   :  { %89 = dma.vmem_to_hbm [thread:$0]  %s87_s1, 16, %s175_s2, [#allocation4]  }
 0x1f8   :  { %128 = dma.done.wait [#allocation4], 16  }
 0x1f9   :  { %129 = vsyncadd [#allocation4], 4294967280 }
 0x1fa   :  { %93 = vsyncpa [#allocation4], 1 }

</bundles_post_ra>
